<compile_context>
chip_gen: v7x
topology: tpu7x:2x2x1
jax: 0.10.0
libtpu: 0.0.40
codegen_flags: <defaults>
</compile_context>

<pallas_src>
import functools

import jax
import jax.numpy as jnp
from jax import lax
from jax.experimental import pallas as pl
from jax.experimental.pallas import tpu as pltpu


def _round_up(v, m):
    return ((v + m - 1) // m) * m


def _lora_linear_kernel(*refs, has_bias, has_lora):
    """One (tm, tn) output tile, accumulated over the K grid axis.

    refs (in order):
      x_ref    : (tm, tk)        activation tile                         [always]
      w_ref    : (tn, tk)        base weight, native (out, in) layout    [always]
      b_ref    : (1, tn)         bias tile                               [if has_bias]
      z_ref    : (tm, r_pad)     scaling * (x @ A^T), precomputed        [if has_lora]
      bmat_ref : (tn, r_pad)     lora_B, native (out, r) layout          [if has_lora]
      o_ref    : (tm, tn)        output tile
      acc_ref  : (tm, tn) f32    accumulator scratch
    """
    it = iter(refs)
    x_ref = next(it)
    w_ref = next(it)
    b_ref = next(it) if has_bias else None
    z_ref = next(it) if has_lora else None
    bmat_ref = next(it) if has_lora else None
    o_ref = next(it)
    acc_ref = next(it)

    k = pl.program_id(2)

    @pl.when(k == 0)
    def _():
        acc_ref[...] = jnp.zeros_like(acc_ref)

    # Base GEMM: x (tm, tk) contracted with W (tn, tk) on the K axis.  W stays
    # in its native nn.Linear (out, in) layout — no HBM transpose anywhere.
    acc_ref[...] += lax.dot_general(
        x_ref[...], w_ref[...], (((1,), (1,)), ((), ())),
        preferred_element_type=jnp.float32)

    @pl.when(k == pl.num_programs(2) - 1)
    def _():
        if has_lora:
            # LoRA-B GEMM: z (tm, r_pad) contracted with B (tn, r_pad); both
            # matmuls accumulate into the same f32 scratch.
            acc_ref[...] += lax.dot_general(
                z_ref[...], bmat_ref[...], (((1,), (1,)), ((), ())),
                preferred_element_type=jnp.float32)
        out = acc_ref[...]
        if has_bias:
            out = out + b_ref[...].astype(jnp.float32)
        o_ref[...] = out.astype(o_ref.dtype)


def lora_adapter_forward(x, W, bias, lora_A, lora_B, *, lora_alpha, r,
                         tm=256, tn=256, tk=512):
    """LoRAAdapter.forward.

    x       : (..., in_features)
    W       : (out_features, in_features)  — native nn.Linear layout
    bias    : (out_features,) or None
    lora_A  : (r, in_features)  (ignored if r == 0)
    lora_B  : (out_features, r) (ignored if r == 0)
    """
    out_features, in_features = W.shape
    lead_shape = x.shape[:-1]
    x2 = x.reshape(-1, in_features)          # (M, K)
    M, K = x2.shape
    N = out_features

    has_bias = bias is not None
    has_lora = r > 0                         # r == 0: base linear only (module fast path)

    # Effective tile sizes: clamp to the padded problem so small shapes don't
    # balloon, while respecting the (8, 128) layout rule.
    tm_e = min(tm, _round_up(max(M, 1), 8))
    tn_e = min(tn, _round_up(max(N, 1), 128))
    tk_e = min(tk, _round_up(max(K, 1), 128))

    M_pad = _round_up(M, tm_e)
    N_pad = _round_up(N, tn_e)
    K_pad = _round_up(K, tk_e)

    # LoRA-A path: tiny GEMM done once in the wrapper (XLA handles it fine).
    # Scaling is folded on the (M, r) tensor; cast to x.dtype ONCE here.
    z = None
    if has_lora:
        scaling = float(lora_alpha) / float(r)
        r_pad = _round_up(r, 128)
        z = lax.dot_general(x2, lora_A, (((1,), (1,)), ((), ())),
                            preferred_element_type=jnp.float32) * scaling
        z = z.astype(x.dtype)
        if (M_pad != M) or (r_pad != r):
            z = jnp.pad(z, ((0, M_pad - M), (0, r_pad - r)))

    # Zero-pad only when needed (aligned shapes incur no HBM copy).  In a real
    # deployment the padded weights would be cached at parameter-load time.
    if (M_pad != M) or (K_pad != K):
        x2 = jnp.pad(x2, ((0, M_pad - M), (0, K_pad - K)))
    Wp = W
    if (N_pad != N) or (K_pad != K):
        Wp = jnp.pad(Wp, ((0, N_pad - N), (0, K_pad - K)))
    b2 = None
    if has_bias:
        b2 = bias.reshape(1, N)
        if N_pad != N:
            b2 = jnp.pad(b2, ((0, 0), (0, N_pad - N)))
    Bp = None
    if has_lora:
        Bp = lora_B
        if (N_pad != N) or (r_pad != r):
            Bp = jnp.pad(Bp, ((0, N_pad - N), (0, r_pad - r)))

    grid = (M_pad // tm_e, N_pad // tn_e, K_pad // tk_e)

    in_specs = [
        pl.BlockSpec((tm_e, tk_e), lambda i, j, k: (i, k)),   # x row/K tile
        pl.BlockSpec((tn_e, tk_e), lambda i, j, k: (j, k)),   # W (out, in) tile
    ]
    inputs = [x2, Wp]
    if has_bias:
        in_specs.append(pl.BlockSpec((1, tn_e), lambda i, j, k: (0, j)))
        inputs.append(b2)
    if has_lora:
        in_specs.append(pl.BlockSpec((tm_e, r_pad), lambda i, j, k: (i, 0)))  # z
        in_specs.append(pl.BlockSpec((tn_e, r_pad), lambda i, j, k: (j, 0)))  # lora_B
        inputs.extend([z, Bp])

    out = pl.pallas_call(
        functools.partial(_lora_linear_kernel,
                          has_bias=has_bias, has_lora=has_lora),
        out_shape=jax.ShapeDtypeStruct((M_pad, N_pad), x.dtype),
        grid_spec=pltpu.PrefetchScalarGridSpec(
            num_scalar_prefetch=0,
            grid=grid,
            in_specs=in_specs,
            out_specs=pl.BlockSpec((tm_e, tn_e), lambda i, j, k: (i, j)),
            scratch_shapes=[pltpu.VMEM((tm_e, tn_e), jnp.float32)],
        ),
        compiler_params=pltpu.CompilerParams(
            # M and N shard across TensorCores; K carries the accumulator so
            # it must stay sequential ("arbitrary", innermost).
            dimension_semantics=("parallel", "parallel", "arbitrary"),
            # Explicit scoped-VMEM budget: safe on v7x (64 MiB physical) and
            # well above the K-tiled working set on every generation.
            vmem_limit_bytes=48 * 1024 * 1024,
        ),
    )(*inputs)

    out = out[:M, :N]
    return out.reshape(*lead_shape, N)


if __name__ == "__main__":
    # Small, module-consistent shapes: batch=2, seq=8, hidden(in)=32, out=64, r=8.
    batch, seq, in_features, out_features, r, lora_alpha = 2, 8, 32, 64, 8, 16
    dtype = jnp.float32

    key = jax.random.PRNGKey(0)
    kx, kw, kb, ka, kbm = jax.random.split(key, 5)

    x = jax.random.normal(kx, (batch, seq, in_features), dtype=dtype)

    # Deterministic synthetic parameters (nn.Linear weight layout: (out, in)).
    W = jax.random.normal(kw, (out_features, in_features), dtype=dtype) * 0.05
    bias = jax.random.normal(kb, (out_features,), dtype=dtype) * 0.01
    # reset_parameters() would zero lora_B; small random values are used so the
    # LoRA path is exercised non-trivially (forward semantics unchanged).
    lora_A = jax.random.normal(ka, (r, in_features), dtype=dtype) * 0.02
    lora_B = jax.random.normal(kbm, (out_features, r), dtype=dtype) * 0.02

    # TODO(synk): lora_dropout > 0 (training-time dropout on the LoRA input)
    # is not implemented; default module config uses identity dropout.

    out = lora_adapter_forward(x, W, bias, lora_A, lora_B,
                               lora_alpha=lora_alpha, r=r)
    out = jax.block_until_ready(out)

    # Pure-JAX reference of the PyTorch forward (r > 0 branch).
    scaling = lora_alpha / r
    ref = (jnp.einsum("bsi,oi->bso", x, W) + bias
           + scaling * jnp.einsum("bsi,ri,or->bso", x, lora_A, lora_B))
    assert out.shape == (batch, seq, out_features)
    assert jnp.allclose(out, ref, atol=1e-4, rtol=1e-4), "mismatch vs reference"

    # r == 0 fast path (base linear only) and bias=None path.
    out0 = jax.block_until_ready(
        lora_adapter_forward(x, W, None, None, None, lora_alpha=1, r=0))
    ref0 = jnp.einsum("bsi,oi->bso", x, W)
    assert jnp.allclose(out0, ref0, atol=1e-4, rtol=1e-4), "mismatch (r=0 path)"

    print("KERNEL_OK")
</pallas_src>

<mosaic_0001>
module attributes {stable_mosaic.version = 11 : i64} {
  func.func @_lora_linear_kernel(%arg0: i32, %arg1: i32, %arg2: i32, %arg3: memref<16x128xf32, #tpu.memory_space<vmem>>, %arg4: memref<128x128xf32, #tpu.memory_space<vmem>>, %arg5: memref<1x128xf32, #tpu.memory_space<vmem>>, %arg6: memref<16x128xf32, #tpu.memory_space<vmem>>, %arg7: memref<128x128xf32, #tpu.memory_space<vmem>>, %arg8: memref<16x128xf32, #tpu.memory_space<vmem>>, %arg9: memref<16x128xf32, #tpu.memory_space<vmem>>) attributes {dimension_semantics = [#tpu.dimension_semantics<parallel>, #tpu.dimension_semantics<parallel>, #tpu.dimension_semantics<arbitrary>], iteration_bounds = array<i64: 1, 1, 1>, scalar_prefetch = 0 : i64, scratch_operands = 1 : i64, tpu.core_type = #tpu.core_type<tc>, window_params = [{transform_indices = @transform_0, window_bounds = array<i64: 16, 128>}, {transform_indices = @transform_1, window_bounds = array<i64: 128, 128>}, {transform_indices = @transform_2, window_bounds = array<i64: 1, 128>}, {transform_indices = @transform_3, window_bounds = array<i64: 16, 128>}, {transform_indices = @transform_4, window_bounds = array<i64: 128, 128>}, {transform_indices = @transform_5, window_bounds = array<i64: 16, 128>}]} {
    %c0_i32 = arith.constant 0 : i32
    %0 = arith.cmpi eq, %arg2, %c0_i32 : i32
    %1 = arith.extui %0 : i1 to i32
    %c0_i32_0 = arith.constant 0 : i32
    %2 = arith.cmpi ne, %1, %c0_i32_0 : i32
    scf.if %2 {
      %cst_10 = arith.constant 0.000000e+00 : f32
      %12 = vector.broadcast %cst_10 : f32 to vector<16x128xf32>
      %c0_11 = arith.constant 0 : index
      %c0_12 = arith.constant 0 : index
      %13 = vector.load %arg9[%c0_11, %c0_12] : memref<16x128xf32, #tpu.memory_space<vmem>>, vector<16x128xf32>
      tpu.vector_store %arg9[%c0_11, %c0_12], %12 {strides = array<i32>} : memref<16x128xf32, #tpu.memory_space<vmem>>, vector<16x128xf32>,
    } else {
    }
    %c0 = arith.constant 0 : index
    %c0_1 = arith.constant 0 : index
    %3 = vector.load %arg9[%c0, %c0_1] : memref<16x128xf32, #tpu.memory_space<vmem>>, vector<16x128xf32>
    %c0_2 = arith.constant 0 : index
    %c0_3 = arith.constant 0 : index
    %4 = vector.load %arg3[%c0_2, %c0_3] : memref<16x128xf32, #tpu.memory_space<vmem>>, vector<16x128xf32>
    %c0_4 = arith.constant 0 : index
    %c0_5 = arith.constant 0 : index
    %5 = vector.load %arg4[%c0_4, %c0_5] : memref<128x128xf32, #tpu.memory_space<vmem>>, vector<128x128xf32>
    %cst = arith.constant dense<0.000000e+00> : vector<16x128xf32>
    %6 = tpu.matmul %4, %5, %cst {dimension_numbers = #tpu.dot_dimension_numbers<[1], [1], [0], [0], [0, 0, 1, 0], [], []>} : vector<16x128xf32>, vector<128x128xf32>, vector<16x128xf32> -> vector<16x128xf32>
    %7 = arith.addf %3, %6 : vector<16x128xf32>
    %c0_6 = arith.constant 0 : index
    %c0_7 = arith.constant 0 : index
    %8 = vector.load %arg9[%c0_6, %c0_7] : memref<16x128xf32, #tpu.memory_space<vmem>>, vector<16x128xf32>
    tpu.vector_store %arg9[%c0_6, %c0_7], %7 {strides = array<i32>} : memref<16x128xf32, #tpu.memory_space<vmem>>, vector<16x128xf32>,
    %c0_i32_8 = arith.constant 0 : i32
    %9 = arith.cmpi eq, %arg2, %c0_i32_8 : i32
    %10 = arith.extui %9 : i1 to i32
    %c0_i32_9 = arith.constant 0 : i32
    %11 = arith.cmpi ne, %10, %c0_i32_9 : i32
    scf.if %11 {
      %c0_10 = arith.constant 0 : index
      %c0_11 = arith.constant 0 : index
      %12 = vector.load %arg9[%c0_10, %c0_11] : memref<16x128xf32, #tpu.memory_space<vmem>>, vector<16x128xf32>
      %c0_12 = arith.constant 0 : index
      %c0_13 = arith.constant 0 : index
      %13 = vector.load %arg6[%c0_12, %c0_13] : memref<16x128xf32, #tpu.memory_space<vmem>>, vector<16x128xf32>
      %c0_14 = arith.constant 0 : index
      %c0_15 = arith.constant 0 : index
      %14 = vector.load %arg7[%c0_14, %c0_15] : memref<128x128xf32, #tpu.memory_space<vmem>>, vector<128x128xf32>
      %cst_16 = arith.constant dense<0.000000e+00> : vector<16x128xf32>
      %15 = tpu.matmul %13, %14, %cst_16 {dimension_numbers = #tpu.dot_dimension_numbers<[1], [1], [0], [0], [0, 0, 1, 0], [], []>} : vector<16x128xf32>, vector<128x128xf32>, vector<16x128xf32> -> vector<16x128xf32>
      %16 = arith.addf %12, %15 : vector<16x128xf32>
      %c0_17 = arith.constant 0 : index
      %c0_18 = arith.constant 0 : index
      %17 = vector.load %arg9[%c0_17, %c0_18] : memref<16x128xf32, #tpu.memory_space<vmem>>, vector<16x128xf32>
      tpu.vector_store %arg9[%c0_17, %c0_18], %16 {strides = array<i32>} : memref<16x128xf32, #tpu.memory_space<vmem>>, vector<16x128xf32>,
      %c0_19 = arith.constant 0 : index
      %c0_20 = arith.constant 0 : index
      %18 = vector.load %arg9[%c0_19, %c0_20] : memref<16x128xf32, #tpu.memory_space<vmem>>, vector<16x128xf32>
      %c0_21 = arith.constant 0 : index
      %c0_22 = arith.constant 0 : index
      %19 = vector.load %arg5[%c0_21, %c0_22] : memref<1x128xf32, #tpu.memory_space<vmem>>, vector<1x128xf32>
      %20 = vector.broadcast %19 : vector<1x128xf32> to vector<16x128xf32>
      %21 = arith.addf %18, %20 : vector<16x128xf32>
      %c0_23 = arith.constant 0 : index
      %c0_24 = arith.constant 0 : index
      %22 = vector.load %arg8[%c0_23, %c0_24] : memref<16x128xf32, #tpu.memory_space<vmem>>, vector<16x128xf32>
      tpu.vector_store %arg8[%c0_23, %c0_24], %21 {strides = array<i32>} : memref<16x128xf32, #tpu.memory_space<vmem>>, vector<16x128xf32>,
    } else {
    }
    return
  }
  func.func @transform_0(%arg0: i32, %arg1: i32, %arg2: i32) -> (i32, i32) {
    %c0_i32 = arith.constant 0 : i32
    return %arg0, %arg2 : i32, i32
  }
  func.func @transform_1(%arg0: i32, %arg1: i32, %arg2: i32) -> (i32, i32) {
    %c0_i32 = arith.constant 0 : i32
    return %arg1, %arg2 : i32, i32
  }
  func.func @transform_2(%arg0: i32, %arg1: i32, %arg2: i32) -> (i32, i32) {
    %c0_i32 = arith.constant 0 : i32
    %c0_i32_0 = arith.constant 0 : i32
    return %c0_i32, %arg1 : i32, i32
  }
  func.func @transform_3(%arg0: i32, %arg1: i32, %arg2: i32) -> (i32, i32) {
    %c0_i32 = arith.constant 0 : i32
    %c0_i32_0 = arith.constant 0 : i32
    return %arg0, %c0_i32 : i32, i32
  }
  func.func @transform_4(%arg0: i32, %arg1: i32, %arg2: i32) -> (i32, i32) {
    %c0_i32 = arith.constant 0 : i32
    %c0_i32_0 = arith.constant 0 : i32
    return %arg1, %c0_i32 : i32, i32
  }
  func.func @transform_5(%arg0: i32, %arg1: i32, %arg2: i32) -> (i32, i32) {
    %c0_i32 = arith.constant 0 : i32
    return %arg0, %arg1 : i32, i32
  }
}

</mosaic_0001>

<bundles_post_ra>
// kernel: tpu_custom_call.1
= control target key start
LH: loop header
LB: loop body
LE: loop exit
PB: predicated region body
PF: predicated region fallthrough
CT: control target
= control target key end

     0   :  { %10 = vsyncpa [#allocation4], 0  ;;  %s742_s0 = inlined_call_operand.hbm [shape: f32[16,128], index: 0, kind: input, shape index: {}]   ;;  %s743_s1 = inlined_call_operand.hbm [shape: f32[128,128], index: 1, kind: input, shape index: {}]   ;;  %s744_s2 = inlined_call_operand.vmem [shape: f32[1,128], index: 2, kind: input, shape index: {}]   ;;  %s745_s3 = inlined_call_operand.hbm [shape: f32[16,128], index: 3, kind: input, shape index: {}]   ;;  %s746_s4 = inlined_call_operand.hbm [shape: f32[128,128], index: 4, kind: input, shape index: {}]   ;;  %s747_s5 = inlined_call_operand.hbm [shape: f32[16,128], index: 5, kind: output, shape index: {}]  }
   0x1   :  { %11 = vsyncpa [#allocation7], 0 }
   0x2   :  { %12 = vsyncpa [#allocation10], 0 }
   0x3   :  { %13 = vsyncpa [#allocation5], 0  ;;  %s613_s18 = smov [#allocation6]   ;;  %s614_s20 = smov [#allocation3]  }
   0x4   :  { %s31_s19 = sshll.u32 %s613_s18, 4  ;;  %s19_s21 = sshll.u32 %s614_s20, 4  ;;  %s32_s19 = int_to_ptr.vmem [resolvable:$true] %s31_s19  ;;  %s650_s21 = int_to_ptr.vmem [resolvable:$true] %s19_s21 }
   0x5   :  { %s495_s24 = scalar_lea.hbm %s743_s1, 2048 }
   0x6   :  { %p496_p0 = scmp.ne.s32.totalorder %s743_s1, %s495_s24  ;;  %p499_p1 = scmp.lt.u32.totalorder %s495_s24, %s743_s1 }
   0x8   :  { %p501_p2 = pnand %p499_p1, %p496_p0 }
   0xa   :  { %504 = shalt.err (!%p501_p2)
}
   0xb   :  { %s505_s29 = scalar_lea.vmem %s32_s19, 2048  ;;  %p510_p4 = scmp.lt.s32.totalorder %s32_s19, %s32_s19 }
   0xc   :  { %p506_p3 = scmp.ne.s32.totalorder %s32_s19, %s505_s29  ;;  %p511_p5 = scmp.lt.s32.totalorder %s505_s29, %s505_s29 }
   0xe   :  { %p512_p6 = por %p511_p5, %p510_p4 }
  0x10   :  { %p513_p7 = pnand %p512_p6, %p506_p3 }
  0x12   :  { %516 = shalt.err (!%p513_p7)
}
  0x13   :  { %s615_s30 = smov 128   ;;  %s616_s6 = smov 8  }
  0x14   :  { %37 = dma.hbm_to_vmem [thread:$0]  %s743_s1, 2048, %s32_s19, [#allocation7], %s615_s30, %s615_s30, %s616_s6  }
  0x15   :  { %s517_s11 = scalar_lea.hbm %s742_s0, 256 }
  0x16   :  { %p518_p8 = scmp.ne.s32.totalorder %s742_s0, %s517_s11  ;;  %p521_p9 = scmp.lt.u32.totalorder %s517_s11, %s742_s0 }
  0x18   :  { %p523_p10 = pnand %p521_p9, %p518_p8 }
  0x1a   :  { %526 = shalt.err (!%p523_p10)
}
  0x1b   :  { %s527_s16 = scalar_lea.vmem %s650_s21, 256  ;;  %p532_p12 = scmp.lt.s32.totalorder %s650_s21, %s650_s21 }
  0x1c   :  { %p528_p11 = scmp.ne.s32.totalorder %s650_s21, %s527_s16  ;;  %p533_p13 = scmp.lt.s32.totalorder %s527_s16, %s527_s16 }
  0x1e   :  { %p534_p0 = por %p533_p13, %p532_p12 }
  0x20   :  { %p535_p1 = pnand %p534_p0, %p528_p11 }
  0x22   :  { %538 = shalt.err (!%p535_p1)
}
  0x23   :  { %25 = dma.hbm_to_vmem [thread:$0]  %s742_s0, 256, %s650_s21, [#allocation4], %s615_s30, %s615_s30, %s616_s6  }
  0x24   :  { %s617_s18 = smov [#allocation8]   ;;  %s618_s20 = smov [#allocation9]  }
  0x25   :  { %s45_s19 = sshll.u32 %s617_s18, 4  ;;  %s57_s22 = sshll.u32 %s618_s20, 4  ;;  %s46_s19 = int_to_ptr.vmem [resolvable:$true] %s45_s19  ;;  %s687_s22 = int_to_ptr.vmem [resolvable:$true] %s57_s22 }
  0x26   :  { %s539_s25 = scalar_lea.hbm %s745_s3, 256 }
  0x27   :  { %p540_p2 = scmp.ne.s32.totalorder %s745_s3, %s539_s25  ;;  %p543_p3 = scmp.lt.u32.totalorder %s539_s25, %s745_s3 }
  0x29   :  { %p545_p4 = pnand %p543_p3, %p540_p2 }
  0x2b   :  { %548 = shalt.err (!%p545_p4)
}
  0x2c   :  { %s549_s0 = scalar_lea.vmem %s46_s19, 256  ;;  %p554_p6 = scmp.lt.s32.totalorder %s46_s19, %s46_s19 }
  0x2d   :  { %p550_p5 = scmp.ne.s32.totalorder %s46_s19, %s549_s0  ;;  %p555_p7 = scmp.lt.s32.totalorder %s549_s0, %s549_s0 }
  0x2f   :  { %p556_p8 = por %p555_p7, %p554_p6 }
  0x31   :  { %p557_p9 = pnand %p556_p8, %p550_p5 }
  0x33   :  { %560 = shalt.err (!%p557_p9)
}
  0x34   :  { %51 = dma.hbm_to_vmem [thread:$0]  %s745_s3, 256, %s46_s19, [#allocation7], %s615_s30, %s615_s30, %s616_s6  }
  0x35   :  { %s561_s10 = scalar_lea.hbm %s746_s4, 2048 }
  0x36   :  { %p562_p10 = scmp.ne.s32.totalorder %s746_s4, %s561_s10  ;;  %p565_p11 = scmp.lt.u32.totalorder %s561_s10, %s746_s4 }
  0x38   :  { %p567_p12 = pnand %p565_p11, %p562_p10 }
  0x3a   :  { %570 = shalt.err (!%p567_p12)
}
  0x3b   :  { %s571_s15 = scalar_lea.vmem %s687_s22, 2048  ;;  %p576_p0 = scmp.lt.s32.totalorder %s687_s22, %s687_s22 }
  0x3c   :  { %p572_p13 = scmp.ne.s32.totalorder %s687_s22, %s571_s15  ;;  %p577_p1 = scmp.lt.s32.totalorder %s571_s15, %s571_s15 }
  0x3e   :  { %p578_p2 = por %p577_p1, %p576_p0 }
  0x40   :  { %p579_p3 = pnand %p578_p2, %p572_p13 }
  0x42   :  { %582 = shalt.err (!%p579_p3)
}
  0x43   :  { %63 = dma.hbm_to_vmem [thread:$0]  %s746_s4, 2048, %s687_s22, [#allocation10], %s615_s30, %s615_s30, %s616_s6  }
  0x44   :  { %605 = dma.done.wait [#allocation4], 256  }
  0x45   :  { %606 = vsyncadd [#allocation4], 4294967040 }
  0x46   :  { %607 = dma.done.wait [#allocation7], 2304  }
  0x47   :  { %608 = vsyncadd [#allocation7], 4294964992 }
  0x48   :  { %609 = dma.done.wait [#allocation10], 2048  }
  0x49   :  { %610 = vsyncadd [#allocation10], 4294965248  ;;  %v86_v0 = vld [vmem:[#allocation6] sm:$0xff]  ;;  %v87_v1 = vld [vmem:[#allocation6 + $0x8] sm:$0xff]  ;;  %s619_s17 = smov [#allocation11]  }
  0x4a   :  { %v188_v2 = vld [vmem:[#allocation9] sm:$0xff]  ;;  %v422_v3 = vpack.c.bf16 %v87_v1, %v86_v0  ;;  %v189_v4 = vld [vmem:[#allocation9 + $0x8] sm:$0xff]  ;;  %v190_v9 = vld [vmem:[#allocation9 + $0x10] sm:$0xff]  ;;  %s301_s18 = sshll.u32 %s619_s17, 4  ;;  %s302_s18 = int_to_ptr.vmem [resolvable:$true] %s301_s18 }
  0x4b   :  { %v88_v5 = vld [vmem:[#allocation6 + $0x10] sm:$0xff]  ;;  %v89_v6 = vld [vmem:[#allocation6 + $0x18] sm:$0xff]  ;;  %v454_v7 = vpack.c.bf16 %v189_v4, %v188_v2  ;;  %v191_v10 = vld [vmem:[#allocation9 + $0x18] sm:$0xff]  ;;  %s583_s19 = scalar_lea.vmem %s302_s18, 256  ;;  %p588_p5 = scmp.lt.s32.totalorder %s302_s18, %s302_s18 }
  0x4c   :  { %v426_v8 = vpack.c.bf16 %v89_v6, %v88_v5  ;;  %423 = vmatprep.subr.bf16.mxu1 %v422_v3  ;;  %v458_v11 = vpack.c.bf16 %v191_v10, %v190_v9  ;;  %v90_v12 = vld [vmem:[#allocation6 + $0x20] sm:$0xff]  ;;  %v91_v13 = vld [vmem:[#allocation6 + $0x28] sm:$0xff]  ;;  %v192_v14 = vld [vmem:[#allocation9 + $0x20] sm:$0xff]  ;;  %p584_p4 = scmp.ne.s32.totalorder %s302_s18, %s583_s19  ;;  %p589_p6 = scmp.lt.s32.totalorder %s583_s19, %s583_s19 }
  0x4d   :  { %455 = vmatprep.subr.bf16.mxu0 %v454_v7  ;;  %425 = vmatpush3.bf16.xpose.msra.mxu1 %v422_v3  ;;  %v193_v15 = vld [vmem:[#allocation9 + $0x28] sm:$0xff]  ;;  %v430_v16 = vpack.c.bf16 %v91_v13, %v90_v12  ;;  %v84_v18 = vld [vmem:[#allocation3] sm:$0xff]  ;;  %v186_v19 = vld [vmem:[#allocation8] sm:$0xff] }
  0x4e   :  { %457 = vmatpush3.bf16.xpose.msra.mxu0 %v454_v7  ;;  %427 = vmatprep.subr.bf16.mxu1 %v426_v8  ;;  %v462_v17 = vpack.c.bf16 %v193_v15, %v192_v14  ;;  %v92_v20 = vld [vmem:[#allocation6 + $0x30] sm:$0xff]  ;;  %v93_v21 = vld [vmem:[#allocation6 + $0x38] sm:$0xff]  ;;  %v194_v22 = vld [vmem:[#allocation9 + $0x30] sm:$0xff]  ;;  %p590_p7 = por %p589_p6, %p588_p5 }
  0x4f   :  { %459 = vmatprep.subr.bf16.mxu0 %v458_v11  ;;  %384 = vmatprep.mubr.f32.mxu1 %v84_v18  ;;  %v195_v23 = vld [vmem:[#allocation9 + $0x38] sm:$0xff]  ;;  %v434_v24 = vpack.c.bf16 %v93_v21, %v92_v20  ;;  %v94_v26 = vld [vmem:[#allocation6 + $0x40] sm:$0xff]  ;;  %v196_v28 = vld [vmem:[#allocation9 + $0x40] sm:$0xff] }
  0x50   :  { %419 = vmatprep.mubr.f32.mxu0 %v186_v19  ;;  %v466_v25 = vpack.c.bf16 %v195_v23, %v194_v22  ;;  %v95_v27 = vld [vmem:[#allocation6 + $0x48] sm:$0xff]  ;;  %v197_v29 = vld [vmem:[#allocation9 + $0x48] sm:$0xff]  ;;  %v96_v32 = vld [vmem:[#allocation6 + $0x50] sm:$0xff]  ;;  %p591_p8 = pnand %p590_p7, %p584_p4 }
  0x51   :  { %v438_v30 = vpack.c.bf16 %v95_v27, %v94_v26  ;;  %v470_v31 = vpack.c.bf16 %v197_v29, %v196_v28  ;;  %v97_v33 = vld [vmem:[#allocation6 + $0x58] sm:$0xff]  ;;  %v198_v34 = vld [vmem:[#allocation9 + $0x50] sm:$0xff]  ;;  %v199_v35 = vld [vmem:[#allocation9 + $0x58] sm:$0xff] }
  0x52   :  { %v442_v36 = vpack.c.bf16 %v97_v33, %v96_v32  ;;  %v474_v37 = vpack.c.bf16 %v199_v35, %v198_v34  ;;  %v98_v38 = vld [vmem:[#allocation6 + $0x60] sm:$0xff]  ;;  %v99_v39 = vld [vmem:[#allocation6 + $0x68] sm:$0xff]  ;;  %v200_v40 = vld [vmem:[#allocation9 + $0x60] sm:$0xff] }
  0x53   :  { %v201_v41 = vld [vmem:[#allocation9 + $0x68] sm:$0xff]  ;;  %v446_v42 = vpack.c.bf16 %v99_v39, %v98_v38  ;;  %v100_v44 = vld [vmem:[#allocation6 + $0x70] sm:$0xff]  ;;  %v202_v46 = vld [vmem:[#allocation9 + $0x70] sm:$0xff] }
  0x54   :  { %v478_v43 = vpack.c.bf16 %v201_v41, %v200_v40  ;;  %v101_v45 = vld [vmem:[#allocation6 + $0x78] sm:$0xff]  ;;  %v203_v47 = vld [vmem:[#allocation9 + $0x78] sm:$0xff]  ;;  %v315_v54 = vld [vmem:[%s744_s2] ss:$0 sm:$0xff] }
  0x55   :  { %429 = vmatpush3.bf16.xpose.msra.mxu1 %v426_v8  ;;  %v450_v48 = vpack.c.bf16 %v101_v45, %v100_v44  ;;  %v482_v49 = vpack.c.bf16 %v203_v47, %v202_v46  ;;  %v85_v50 = vld [vmem:[#allocation3 + $0x8] sm:$0xff]  ;;  %v187_v51 = vld [vmem:[#allocation8 + $0x8] sm:$0xff] }
  0x56   :  { %461 = vmatpush3.bf16.xpose.msra.mxu0 %v458_v11  ;;  %431 = vmatprep.subr.bf16.mxu1 %v430_v16 }
  0x57   :  { %463 = vmatprep.subr.bf16.mxu0 %v462_v17 }
  0x5d   :  { %433 = vmatpush3.bf16.xpose.msra.mxu1 %v430_v16 }
  0x5e   :  { %465 = vmatpush3.bf16.xpose.msra.mxu0 %v462_v17  ;;  %435 = vmatprep.subr.bf16.mxu1 %v434_v24 }
  0x5f   :  { %467 = vmatprep.subr.bf16.mxu0 %v466_v25 }
  0x65   :  { %437 = vmatpush3.bf16.xpose.msra.mxu1 %v434_v24 }
  0x66   :  { %469 = vmatpush3.bf16.xpose.msra.mxu0 %v466_v25  ;;  %439 = vmatprep.subr.bf16.mxu1 %v438_v30 }
  0x67   :  { %471 = vmatprep.subr.bf16.mxu0 %v470_v31 }
  0x6d   :  { %441 = vmatpush3.bf16.xpose.msra.mxu1 %v438_v30 }
  0x6e   :  { %473 = vmatpush3.bf16.xpose.msra.mxu0 %v470_v31  ;;  %443 = vmatprep.subr.bf16.mxu1 %v442_v36 }
  0x6f   :  { %475 = vmatprep.subr.bf16.mxu0 %v474_v37 }
  0x75   :  { %445 = vmatpush3.bf16.xpose.msra.mxu1 %v442_v36 }
  0x76   :  { %477 = vmatpush3.bf16.xpose.msra.mxu0 %v474_v37  ;;  %447 = vmatprep.subr.bf16.mxu1 %v446_v42 }
  0x77   :  { %479 = vmatprep.subr.bf16.mxu0 %v478_v43 }
  0x7d   :  { %449 = vmatpush3.bf16.xpose.msra.mxu1 %v446_v42 }
  0x7e   :  { %481 = vmatpush3.bf16.xpose.msra.mxu0 %v478_v43  ;;  %451 = vmatprep.subr.bf16.mxu1 %v450_v48 }
  0x7f   :  { %483 = vmatprep.subr.bf16.mxu0 %v482_v49 }
  0x85   :  { %453 = vmatpush3.bf16.xpose.msra.mxu1 %v450_v48 }
  0x86   :  { %485 = vmatpush3.bf16.xpose.msra.mxu0 %v482_v49 }
  0x8c   :  { %385 = vmatmul.mubr.f32.vlgmr.msra.gmra.mrb[0].mxu1 %v85_v50 }
  0x8d   :  { %420 = vmatmul.mubr.f32.vlgmr.msra.gmra.mrb[0].mxu0 %v187_v51 }
 0x15f   :  { %v386_v52 = vpop.f32.mrb[0].mxu1 }
 0x160   :  { %v421_v53 = vpop.f32.mrb[0].mxu0  ;;  %v168_v55 = vpop.f32.mrb[1].mxu1 }
 0x161   :  { %v280_v56 = vadd.f32 %v421_v53, %v386_v52  ;;  %v270_v57 = vpop.f32.mrb[1].mxu0 }
 0x162   :  { %v279_v58 = vadd.f32 %v270_v57, %v168_v55 }
 0x163   :  { %v293_v59 = vadd.f32 %v315_v54, %v280_v56 }
 0x164   :  { %v292_v60 = vadd.f32 %v315_v54, %v279_v58 }
 0x165   :  { %295 = vst [vmem:[#allocation11 + $0x8] sm:$0xff] %v293_v59 }
 0x166   :  { %294 = vst [vmem:[#allocation11] sm:$0xff] %v292_v60 }
 0x167   :  { %594 = shalt.err (!%p591_p8)
}
 0x168   :  { %s595_s22 = scalar_lea.hbm %s747_s5, 256 }
 0x169   :  { %p596_p9 = scmp.ne.s32.totalorder %s747_s5, %s595_s22  ;;  %p599_p10 = scmp.lt.u32.totalorder %s595_s22, %s747_s5 }
 0x16b   :  { %p601_p11 = pnand %p599_p10, %p596_p9 }
 0x16d   :  { %604 = shalt.err (!%p601_p11)
}
 0x16e   :  { %307 = dma.vmem_to_hbm [thread:$0]  %s302_s18, 256, %s747_s5, [#allocation5], %s615_s30, %s615_s30, %s616_s6  }
 0x16f   :  { %611 = dma.done.wait [#allocation5], 256  }
 0x170   :  { %612 = vsyncadd [#allocation5], 4294967040 }
 0x171   :  { %311 = vsyncpa [#allocation4], 1 }
 0x172   :  { %312 = vsyncpa [#allocation7], 1 }
 0x173   :  { %313 = vsyncpa [#allocation10], 1 }
 0x174   :  { %314 = vsyncpa [#allocation5], 1 }

</bundles_post_ra>
